<compile_context>
chip_gen: v7x
topology: tpu7x:2x2x1
jax: 0.10.0
libtpu: 0.0.40
codegen_flags: <defaults>
</compile_context>

<pallas_src>
import functools
import math

import jax
import jax.numpy as jnp
from jax import lax
from jax.experimental import pallas as pl
from jax.experimental.pallas import tpu as pltpu


_TARGET_BLOCK_BYTES = 2 * 1024 * 1024  # ~2 MiB per input block (x2 double-buffered)


def _round_rows(want, total):
    """Row count satisfying the sublane rule: multiple of 8, or the full extent."""
    if want >= total:
        return total
    if total < 8:
        return total
    return max(8, (want // 8) * 8)


# ---------------------------------------------------------------------------
# Kernel 1: argmax over axis=1 of a block.
#   3-D block (BP, C, PT) -> out (BP, PT)     (general case, C on sublanes)
#   2-D block (BP, C)     -> out (BP, 1)      (dim == last axis, C on lanes)
# Fully vectorized: max reduce + equality + iota + min reduce.  First maximal
# index via the min over equal positions; NaN treated as maximal.
# ---------------------------------------------------------------------------
def _argmax_dim_kernel(x_ref, o_ref, *, is_float):
    x = x_ref[...]
    xv = x.astype(jnp.float32) if is_float else x.astype(jnp.int32)
    m = jnp.max(xv, axis=1, keepdims=True)
    hit = xv == m
    if is_float:
        hit = hit | (jnp.isnan(xv) & jnp.isnan(m))  # NaN slice -> first NaN wins
    idx = lax.broadcasted_iota(jnp.int32, xv.shape, 1)
    cand = jnp.where(hit, idx, xv.shape[1])
    o_ref[...] = jnp.min(cand, axis=1).reshape(o_ref.shape)


# ---------------------------------------------------------------------------
# Kernel 2: flat argmax over lane-dense (TR, 128) row tiles with a running
# (best_val, best_idx) accumulator in VMEM scratch (strict '>' keeps the
# first occurrence; per-slot ties across tiles resolved by processing order,
# cross-slot ties resolved by the final min-index combine).
# ---------------------------------------------------------------------------
def _argmax_flat_kernel(x_ref, o_ref, bv_ref, bi_ref, *, n_rows, is_float):
    pid = pl.program_id(0)
    x = x_ref[...]                                    # (TR, 128)
    tr, nl = x.shape
    xv = x.astype(jnp.float32) if is_float else x.astype(jnp.int32)

    row = lax.broadcasted_iota(jnp.int32, x.shape, 0)
    col = lax.broadcasted_iota(jnp.int32, x.shape, 1)
    grow = pid * tr + row                             # global row index
    gidx = grow * nl + col                            # global flat index

    if n_rows % tr != 0:                              # static: grid overhangs the array
        valid = grow < n_rows
        neg = -jnp.inf if is_float else jnp.iinfo(jnp.int32).min
        xv = jnp.where(valid, xv, neg)
        gidx = jnp.where(valid, gidx, jnp.iinfo(jnp.int32).max)

    def beats(v, cur):                                # strict '>' keeps FIRST max; NaN wins
        b = v > cur
        if is_float:
            b = b | (jnp.isnan(v) & ~jnp.isnan(cur))
        return b

    @pl.when(pid == 0)
    def _init():
        bv_ref[...] = xv
        bi_ref[...] = gidx

    @pl.when(pid != 0)
    def _fold():
        cur_v = bv_ref[...]
        cur_i = bi_ref[...]
        take = beats(xv, cur_v)
        bv_ref[...] = jnp.where(take, xv, cur_v)
        bi_ref[...] = jnp.where(take, gidx, cur_i)

    @pl.when(pid == pl.num_programs(0) - 1)
    def _finalize():
        bv = bv_ref[...]
        bi = bi_ref[...]
        gmax = jnp.max(bv, keepdims=True)             # (1, 1)
        hit = bv == gmax
        if is_float:
            hit = hit | (jnp.isnan(bv) & jnp.isnan(gmax))
        cand = jnp.where(hit, bi, jnp.iinfo(jnp.int32).max)
        o_ref[...] = jnp.min(cand, keepdims=True)     # (1, 1) first maximal flat index


# ---------------------------------------------------------------------------
# Wrappers
# ---------------------------------------------------------------------------
def _argmax_flat(x):
    is_float = bool(jnp.issubdtype(x.dtype, jnp.floating))
    flat = x.reshape(-1)
    T = flat.shape[0]
    if T % 128 != 0:
        # TODO(synk): mask the ragged lane tail in-kernel instead of this (rare) pad copy.
        fill = -jnp.inf if is_float else jnp.iinfo(x.dtype).min
        flat = jnp.pad(flat, (0, (-T) % 128), constant_values=fill)
    R = flat.shape[0] // 128
    x2 = flat.reshape(R, 128)                     # lane-dense 2-D view (free reshape)

    TR = R if R <= 1024 else 1024                 # <=512 KiB f32 per block; 1024 % 8 == 0
    nblk = pl.cdiv(R, TR)
    acc_dt = jnp.float32 if is_float else jnp.int32

    out = pl.pallas_call(
        functools.partial(_argmax_flat_kernel, n_rows=R, is_float=is_float),
        out_shape=jax.ShapeDtypeStruct((1, 1), jnp.int32),
        grid=(nblk,),
        in_specs=[pl.BlockSpec((TR, 128), lambda i: (i, 0))],
        out_specs=pl.BlockSpec((1, 1), lambda i: (0, 0)),
        scratch_shapes=[pltpu.VMEM((TR, 128), acc_dt),
                        pltpu.VMEM((TR, 128), jnp.int32)],
        compiler_params=pltpu.CompilerParams(
            dimension_semantics=("arbitrary",)),  # reduction axis with carried scratch
    )(x2)
    return out[0, 0]


def _argmax_dim(x, dim):
    d = dim % x.ndim
    C = x.shape[d]
    pre = math.prod(x.shape[:d])
    post = math.prod(x.shape[d + 1:])
    is_float = bool(jnp.issubdtype(x.dtype, jnp.floating))
    kernel = functools.partial(_argmax_dim_kernel, is_float=is_float)
    out_nd_shape = x.shape[:d] + x.shape[d + 1:]
    itemsize = x.dtype.itemsize

    def _compiler_params(sems, in_block_bytes):
        vmem_limit = None
        if 2 * in_block_bytes > 24 * 2**20:       # raise scoped VMEM when blocks are big
            vmem_limit = min(int(4.5 * in_block_bytes) + (8 << 20), 128 * 2**20)
        return pltpu.CompilerParams(dimension_semantics=sems,
                                    vmem_limit_bytes=vmem_limit)

    if post == 1:
        # dim is the LAST axis: reduce over lanes of a (pre, C) view.
        x2 = x.reshape(pre, C)
        BP = _round_rows(max(1, _TARGET_BLOCK_BYTES // (C * 4)), pre)
        out = pl.pallas_call(
            kernel,
            out_shape=jax.ShapeDtypeStruct((pre, 1), jnp.int32),
            grid=(pl.cdiv(pre, BP),),
            in_specs=[pl.BlockSpec((BP, C), lambda i: (i, 0))],
            out_specs=pl.BlockSpec((BP, 1), lambda i: (i, 0)),
            compiler_params=_compiler_params(("parallel",), BP * C * itemsize),
        )(x2)
        return out.reshape(out_nd_shape)

    x3 = x.reshape(pre, C, post)
    if post % 128 == 0:
        PT = min(post, max(128, (_TARGET_BLOCK_BYTES // (C * 4)) // 128 * 128))
    else:
        PT = post                                  # full extent (keeps BlockSpec legal)
    BP = _round_rows(max(1, _TARGET_BLOCK_BYTES // (C * PT * 4)), pre)
    out = pl.pallas_call(
        kernel,
        out_shape=jax.ShapeDtypeStruct((pre, post), jnp.int32),
        grid=(pl.cdiv(pre, BP), pl.cdiv(post, PT)),
        in_specs=[pl.BlockSpec((BP, C, PT), lambda i, j: (i, 0, j))],
        out_specs=pl.BlockSpec((BP, PT), lambda i, j: (i, j)),
        compiler_params=_compiler_params(("parallel", "parallel"),
                                         BP * C * PT * itemsize),
    )(x3)
    return out.reshape(out_nd_shape)


def argmax_pallas(x, dim=None):
    """Pallas equivalent of torch.argmax(x, dim) (int32 indices)."""
    if dim is None:
        return _argmax_flat(x)
    return _argmax_dim(x, dim)


if __name__ == "__main__":
    key = jax.random.PRNGKey(0)
    x = jax.random.normal(key, (2, 4, 16, 16), dtype=jnp.float32)  # NCHW

    # ArgMax(dim=None) — flattened argmax (module default)
    y_flat = jax.block_until_ready(argmax_pallas(x, dim=None))
    ref_flat = jnp.argmax(x)
    assert int(y_flat) == int(ref_flat), (int(y_flat), int(ref_flat))

    # ArgMax(dim=1) — typical segmentation usage (class axis)
    y_dim = jax.block_until_ready(argmax_pallas(x, dim=1))
    ref_dim = jnp.argmax(x, axis=1)
    assert y_dim.shape == (2, 16, 16)
    assert bool(jnp.all(y_dim == ref_dim))

    # ArgMax(dim=-1) — last-axis path (lane reduction)
    y_last = jax.block_until_ready(argmax_pallas(x, dim=-1))
    ref_last = jnp.argmax(x, axis=-1)
    assert y_last.shape == (2, 4, 16)
    assert bool(jnp.all(y_last == ref_last))

    print("KERNEL_OK")
</pallas_src>

<mosaic_0001>
module attributes {stable_mosaic.version = 11 : i64} {
  func.func @_argmax_flat_kernel(%arg0: i32, %arg1: memref<16x128xf32, #tpu.memory_space<vmem>>, %arg2: memref<1x1xi32, #tpu.memory_space<vmem>>, %arg3: memref<16x128xf32, #tpu.memory_space<vmem>>, %arg4: memref<16x128xi32, #tpu.memory_space<vmem>>) attributes {dimension_semantics = [#tpu.dimension_semantics<arbitrary>], iteration_bounds = array<i64: 1>, scalar_prefetch = 0 : i64, scratch_operands = 2 : i64, tpu.core_type = #tpu.core_type<tc>, window_params = [{transform_indices = @transform_0, window_bounds = array<i64: 16, 128>}, {pipeline_mode = #tpu.pipeline_mode<synchronous>, transform_indices = @transform_1, window_bounds = array<i64: 1, 1>}]} {
    %c0 = arith.constant 0 : index
    %c0_0 = arith.constant 0 : index
    %0 = vector.load %arg1[%c0, %c0_0] : memref<16x128xf32, #tpu.memory_space<vmem>>, vector<16x128xf32>
    %1 = tpu.iota {dimensions = array<i32: 0>} : vector<16x128xi32>
    %2 = tpu.iota {dimensions = array<i32: 1>} : vector<16x128xi32>
    %c16_i32 = arith.constant 16 : i32
    %3 = arith.muli %arg0, %c16_i32 : i32
    %4 = vector.broadcast %3 : i32 to vector<16x128xi32>
    %5 = arith.addi %4, %1 : vector<16x128xi32>
    %c128_i32 = arith.constant 128 : i32
    %6 = vector.broadcast %c128_i32 : i32 to vector<16x128xi32>
    %7 = arith.muli %5, %6 : vector<16x128xi32>
    %8 = arith.addi %7, %2 : vector<16x128xi32>
    %c0_i32 = arith.constant 0 : i32
    %9 = arith.cmpi eq, %arg0, %c0_i32 : i32
    %10 = arith.extui %9 : i1 to i32
    %c0_i32_1 = arith.constant 0 : i32
    %11 = arith.cmpi ne, %10, %c0_i32_1 : i32
    scf.if %11 {
      %c0_6 = arith.constant 0 : index
      %c0_7 = arith.constant 0 : index
      %18 = vector.load %arg3[%c0_6, %c0_7] : memref<16x128xf32, #tpu.memory_space<vmem>>, vector<16x128xf32>
      tpu.vector_store %arg3[%c0_6, %c0_7], %0 {strides = array<i32>} : memref<16x128xf32, #tpu.memory_space<vmem>>, vector<16x128xf32>,
      %c0_8 = arith.constant 0 : index
      %c0_9 = arith.constant 0 : index
      %19 = vector.load %arg4[%c0_8, %c0_9] : memref<16x128xi32, #tpu.memory_space<vmem>>, vector<16x128xi32>
      tpu.vector_store %arg4[%c0_8, %c0_9], %8 {strides = array<i32>} : memref<16x128xi32, #tpu.memory_space<vmem>>, vector<16x128xi32>,
    } else {
    }
    %c0_i32_2 = arith.constant 0 : i32
    %12 = arith.cmpi ne, %arg0, %c0_i32_2 : i32
    %13 = arith.extui %12 : i1 to i32
    %c0_i32_3 = arith.constant 0 : i32
    %14 = arith.cmpi ne, %13, %c0_i32_3 : i32
    scf.if %14 {
      %c0_6 = arith.constant 0 : index
      %c0_7 = arith.constant 0 : index
      %18 = vector.load %arg3[%c0_6, %c0_7] : memref<16x128xf32, #tpu.memory_space<vmem>>, vector<16x128xf32>
      %c0_8 = arith.constant 0 : index
      %c0_9 = arith.constant 0 : index
      %19 = vector.load %arg4[%c0_8, %c0_9] : memref<16x128xi32, #tpu.memory_space<vmem>>, vector<16x128xi32>
      %20 = arith.cmpf ogt, %0, %18 : vector<16x128xf32>
      %21 = arith.cmpf one, %0, %0 : vector<16x128xf32>
      %22 = arith.cmpf one, %18, %18 : vector<16x128xf32>
      %cst = arith.constant dense<true> : vector<16x128xi1>
      %23 = arith.xori %22, %cst : vector<16x128xi1>
      %24 = arith.andi %21, %23 : vector<16x128xi1>
      %25 = arith.ori %20, %24 : vector<16x128xi1>
      %26 = arith.select %25, %0, %18 : vector<16x128xi1>, vector<16x128xf32>
      %c0_10 = arith.constant 0 : index
      %c0_11 = arith.constant 0 : index
      %27 = vector.load %arg3[%c0_10, %c0_11] : memref<16x128xf32, #tpu.memory_space<vmem>>, vector<16x128xf32>
      tpu.vector_store %arg3[%c0_10, %c0_11], %26 {strides = array<i32>} : memref<16x128xf32, #tpu.memory_space<vmem>>, vector<16x128xf32>,
      %28 = arith.select %25, %8, %19 : vector<16x128xi1>, vector<16x128xi32>
      %c0_12 = arith.constant 0 : index
      %c0_13 = arith.constant 0 : index
      %29 = vector.load %arg4[%c0_12, %c0_13] : memref<16x128xi32, #tpu.memory_space<vmem>>, vector<16x128xi32>
      tpu.vector_store %arg4[%c0_12, %c0_13], %28 {strides = array<i32>} : memref<16x128xi32, #tpu.memory_space<vmem>>, vector<16x128xi32>,
    } else {
    }
    %c0_i32_4 = arith.constant 0 : i32
    %15 = arith.cmpi eq, %arg0, %c0_i32_4 : i32
    %16 = arith.extui %15 : i1 to i32
    %c0_i32_5 = arith.constant 0 : i32
    %17 = arith.cmpi ne, %16, %c0_i32_5 : i32
    scf.if %17 {
      %c0_6 = arith.constant 0 : index
      %c0_7 = arith.constant 0 : index
      %18 = vector.load %arg3[%c0_6, %c0_7] : memref<16x128xf32, #tpu.memory_space<vmem>>, vector<16x128xf32>
      %c0_8 = arith.constant 0 : index
      %c0_9 = arith.constant 0 : index
      %19 = vector.load %arg4[%c0_8, %c0_9] : memref<16x128xi32, #tpu.memory_space<vmem>>, vector<16x128xi32>
      %20 = vector.shape_cast %18 : vector<16x128xf32> to vector<1x16x128xf32>
      %cst = arith.constant dense<0xFF800000> : vector<1xf32>
      %21 = vector.multi_reduction <maximumf>, %20, %cst [1, 2] : vector<1x16x128xf32> to vector<1xf32>
      %22 = vector.shape_cast %21 : vector<1xf32> to vector<1x1x1xf32>
      %23 = vector.extract %22[0, 0, 0] : f32 from vector<1x1x1xf32>
      %24 = vector.broadcast %23 : f32 to vector<1x1xf32>
      %25 = vector.broadcast %24 : vector<1x1xf32> to vector<16x128xf32>
      %26 = arith.cmpf oeq, %18, %25 : vector<16x128xf32>
      %27 = arith.cmpf one, %18, %18 : vector<16x128xf32>
      %28 = arith.cmpf one, %24, %24 : vector<1x1xf32>
      %29 = vector.broadcast %28 : vector<1x1xi1> to vector<16x128xi1>
      %30 = arith.andi %27, %29 : vector<16x128xi1>
      %31 = arith.ori %26, %30 : vector<16x128xi1>
      %c2147483647_i32 = arith.constant 2147483647 : i32
      %32 = vector.broadcast %c2147483647_i32 : i32 to vector<16x128xi32>
      %33 = arith.select %31, %19, %32 : vector<16x128xi1>, vector<16x128xi32>
      %34 = vector.shape_cast %33 : vector<16x128xi32> to vector<1x16x128xi32>
      %cst_10 = arith.constant dense<2147483647> : vector<1xi32>
      %35 = vector.multi_reduction <minsi>, %34, %cst_10 [1, 2] : vector<1x16x128xi32> to vector<1xi32>
      %36 = vector.shape_cast %35 : vector<1xi32> to vector<1x1x1xi32>
      %37 = vector.extract %36[0, 0, 0] : i32 from vector<1x1x1xi32>
      %38 = vector.broadcast %37 : i32 to vector<1x1xi32>
      %c0_11 = arith.constant 0 : index
      %c0_12 = arith.constant 0 : index
      %39 = vector.load %arg2[%c0_11, %c0_12] : memref<1x1xi32, #tpu.memory_space<vmem>>, vector<1x1xi32>
      tpu.vector_store %arg2[%c0_11, %c0_12], %38 {strides = array<i32>} : memref<1x1xi32, #tpu.memory_space<vmem>>, vector<1x1xi32>,
    } else {
    }
    return
  }
  func.func @transform_0(%arg0: i32) -> (i32, i32) {
    %c0_i32 = arith.constant 0 : i32
    %c0_i32_0 = arith.constant 0 : i32
    return %arg0, %c0_i32 : i32, i32
  }
  func.func @transform_1(%arg0: i32) -> (i32, i32) {
    %c0_i32 = arith.constant 0 : i32
    %c0_i32_0 = arith.constant 0 : i32
    %c0_i32_1 = arith.constant 0 : i32
    return %c0_i32, %c0_i32_0 : i32, i32
  }
}

</mosaic_0001>

<bundles_post_ra>
// kernel: tpu_custom_call.1
= control target key start
LH: loop header
LB: loop body
LE: loop exit
PB: predicated region body
PF: predicated region fallthrough
CT: control target
= control target key end

     0   :  { %6 = vsyncpa [#allocation5], 0  ;;  %s243_s0 = inlined_call_operand.hbm [shape: f32[16,128], index: 0, kind: input, shape index: {}]   ;;  %s244_s1 = inlined_call_operand.hbm [shape: s32[1,1], index: 1, kind: output, shape index: {}]  }
   0x1   :  { %7 = vsyncpa [#allocation6], 0  ;;  %s205_s6 = smov [#allocation4]   ;;  %s157_s10 = scalar_lea.hbm %s243_s0, 256 }
   0x2   :  { %s13_s7 = sshll.u32 %s205_s6, 4  ;;  %p158_p0 = scmp.ne.s32.totalorder %s243_s0, %s157_s10  ;;  %s14_s7 = int_to_ptr.vmem [resolvable:$true] %s13_s7 }
   0x3   :  { %p161_p1 = scmp.lt.u32.totalorder %s157_s10, %s243_s0 }
   0x5   :  { %p163_p2 = pnand %p161_p1, %p158_p0 }
   0x7   :  { %166 = shalt.err (!%p163_p2)
}
   0x8   :  { %s167_s15 = scalar_lea.vmem %s14_s7, 256  ;;  %p172_p4 = scmp.lt.s32.totalorder %s14_s7, %s14_s7 }
   0x9   :  { %p168_p3 = scmp.ne.s32.totalorder %s14_s7, %s167_s15  ;;  %p173_p5 = scmp.lt.s32.totalorder %s167_s15, %s167_s15 }
   0xb   :  { %p174_p6 = por %p173_p5, %p172_p4 }
   0xd   :  { %p175_p7 = pnand %p174_p6, %p168_p3 }
   0xf   :  { %178 = shalt.err (!%p175_p7)
}
  0x10   :  { %s206_s16 = smov 128   ;;  %s207_s17 = smov 8  }
  0x11   :  { %19 = dma.hbm_to_vmem [thread:$0]  %s243_s0, 256, %s14_s7, [#allocation5], %s206_s16, %s206_s16, %s207_s17  }
  0x12   :  { %201 = dma.done.wait [#allocation5], 256  }
  0x13   :  { %202 = vsyncadd [#allocation5], 4294967040  ;;  %v23_v0 = vld [vmem:[#allocation4] sm:$0xff]  ;;  %v24_v1 = vld [vmem:[#allocation4 + $0x8] sm:$0xff]  ;;  %v25_v10 = vlaneseq  ;;  %s208_s20 = smov [#allocation7]   ;;  %vm132_vm14 = vcmask 0  }
  0x14   :  { %v81_v2 = vmax.f32 %v23_v0, %v24_v1  ;;  %vm94_vm0 = vcmp.ne.f32.partialorder %v23_v0, %v23_v0  ;;  %vm95_vm1 = vcmp.ne.f32.partialorder %v24_v1, %v24_v1  ;;  %s140_s21 = sshll.u32 %s208_s20, 4  ;;  %s141_s21 = int_to_ptr.vmem [resolvable:$true] %s140_s21 }
  0x15   :  { %v26_v11 = vshrl.u32 %v25_v10, 7  ;;  %v29_v13 = vand.u32 127, %v25_v10  ;;  %s179_s23 = scalar_lea.vmem %s141_s21, 16  ;;  %s183_s24 = scalar_lea.vmem %s141_s21, 32 }
  0x16   :  { %82 = vmax.xlane.f32.xlu0 %v81_v2  ;;  %p180_p8 = scmp.ne.s32.totalorder %s141_s21, %s179_s23  ;;  %p184_p9 = scmp.lt.s32.totalorder %s141_s21, %s141_s21 }
  0x17   :  { %v27_v12 = vadd.s32 8, %v26_v11  ;;  %v34_v14 = vmul.u32 128, %v26_v11  ;;  %p185_p10 = scmp.lt.s32.totalorder %s183_s24, %s179_s23 }
  0x19   :  { %v35_v15 = vmul.u32 128, %v27_v12  ;;  %v36_v17 = vadd.s32 %v34_v14, %v29_v13  ;;  %p186_p11 = por %p185_p10, %p184_p9 }
  0x1b   :  { %v37_v18 = vadd.s32 %v35_v15, %v29_v13  ;;  %p187_p12 = pnand %p186_p11, %p180_p8 }
  0xa3   :  { %v83_v3 = vpop.xlane.xlu0 %82 }
  0xa4   :  { %v84_v4 = vrot.slane %v83_v3, 4 }
  0xa6   :  { %v85_v5 = vmax.f32 %v83_v3, %v84_v4 }
  0xa8   :  { %v86_v6 = vrot.slane %v85_v5, 2 }
  0xaa   :  { %v87_v7 = vmax.f32 %v85_v5, %v86_v6 }
  0xac   :  { %v88_v8 = vrot.slane %v87_v7, 1 }
  0xae   :  { %v89_v9 = vmax.f32 %v87_v7, %v88_v8 }
  0xb0   :  { %149 = vpush %v89_v9 }
  0xe1   :  { %s150_s0 = spop %149 }
  0xe2   :  { %v91_v16 = vstv %s150_s0 }
  0xe3   :  { %vm92_vm2 = vcmp.eq.f32.partialorder %v23_v0, %v91_v16  ;;  %vm96_vm3 = vcmp.ne.f32.partialorder %v91_v16, %v91_v16  ;;  %vm93_vm4 = vcmp.eq.f32.partialorder %v24_v1, %v91_v16 }
  0xe4   :  { %vm99_vm5 = vmand %vm94_vm0, %vm96_vm3 }
  0xe5   :  { %vm100_vm6 = vmand %vm95_vm1, %vm96_vm3 }
  0xe6   :  { %vm101_vm7 = vmor %vm92_vm2, %vm99_vm5 }
  0xe7   :  { %vm102_vm8 = vmor %vm93_vm4, %vm100_vm6  ;;  %v103_v19 = vsel %vm101_vm7, %v36_v17, 2147483647 }
  0xe8   :  { %v104_v20 = vsel %vm102_vm8, %v37_v18, 2147483647 }
  0xe9   :  { %vm105_vm9 = vcmp.lt.s32.totalorder %v103_v19, %v104_v20 }
  0xea   :  { %v106_v21 = vsel %vm105_vm9, %v103_v19, %v104_v20 }
  0xeb   :  { %v108_v22 = vshra.s32 %v106_v21, 16  ;;  %v107_v24 = vand.u32 65535, %v106_v21 }
  0xed   :  { %v110_v23 = vcvt.s32.f32 %v108_v22  ;;  %v109_v26 = vcvt.s32.f32 %v107_v24 }
  0xef   :  { %111 = vmin.xlane.f32.xlu0 %v110_v23 }
 0x17c   :  { %v112_v25 = vpop.xlane.xlu0 %111 }
 0x17d   :  { %vm113_vm10 = vcmp.eq.f32.partialorder %v110_v23, %v112_v25  ;;  %v118_v28 = vcvt.f32.s32 %v112_v25 }
 0x17e   :  { %v114_v27 = vsel %vm113_vm10, %v109_v26, inf }
 0x17f   :  { %115 = vmin.xlane.f32.xlu1 %v114_v27  ;;  %v119_v30 = vshll.u32 %v118_v28, 16 }
 0x20c   :  { %v116_v29 = vpop.xlane.xlu1 %115 }
 0x20d   :  { %v117_v31 = vcvt.f32.s32 %v116_v29 }
 0x20f   :  { %v120_v32 = vadd.s32 %v119_v30, %v117_v31 }
 0x211   :  { %v121_v33 = vrot.slane %v120_v32, 4 }
 0x213   :  { %vm122_vm11 = vcmp.lt.s32.totalorder %v120_v32, %v121_v33 }
 0x214   :  { %v123_v34 = vsel %vm122_vm11, %v120_v32, %v121_v33 }
 0x215   :  { %v124_v35 = vrot.slane %v123_v34, 2 }
 0x217   :  { %vm125_vm12 = vcmp.lt.s32.totalorder %v123_v34, %v124_v35 }
 0x218   :  { %v126_v36 = vsel %vm125_vm12, %v123_v34, %v124_v35 }
 0x219   :  { %v127_v37 = vrot.slane %v126_v36, 1 }
 0x21b   :  { %vm128_vm13 = vcmp.lt.s32.totalorder %v126_v36, %v127_v37 }
 0x21c   :  { %v129_v38 = vsel %vm128_vm13, %v126_v36, %v127_v37 }
 0x21d   :  { %151 = vpush %v129_v38 }
 0x24e   :  { %s152_s22 = spop %151 }
 0x24f   :  { %v131_v39 = vstv %s152_s22 }
 0x250   :  { %133 = vst.msk [vmem:[#allocation7] sm:$0x1] %vm132_vm14, %v131_v39 }
 0x251   :  { %190 = shalt.err (!%p187_p12)
}
 0x252   :  { %s191_s27 = scalar_lea.hbm %s244_s1, 16 }
 0x253   :  { %p192_p13 = scmp.ne.s32.totalorder %s244_s1, %s191_s27  ;;  %p195_p0 = scmp.lt.u32.totalorder %s191_s27, %s244_s1 }
 0x255   :  { %p197_p1 = pnand %p195_p0, %p192_p13 }
 0x257   :  { %200 = shalt.err (!%p197_p1)
}
 0x258   :  { %143 = dma.vmem_to_hbm [thread:$0]  %s141_s21, 16, %s244_s1, [#allocation6]  }
 0x259   :  { %203 = dma.done.wait [#allocation6], 16  }
 0x25a   :  { %204 = vsyncadd [#allocation6], 4294967280 }
 0x25b   :  { %147 = vsyncpa [#allocation5], 1 }
 0x25c   :  { %148 = vsyncpa [#allocation6], 1 }

</bundles_post_ra>
